<compile_context>
chip_gen: v7x
topology: tpu7x:2x2x1
jax: 0.10.0
libtpu: 0.0.40
codegen_flags: <defaults>
</compile_context>

<pallas_src>
import jax
import jax.numpy as jnp
from jax.experimental import pallas as pl
from jax.experimental.pallas import tpu as pltpu

HIDDEN = 1024


def _round_up(n, m):
    return ((n + m - 1) // m) * m


def _cdiv(a, b):
    return -(-a // b)


def predictor_kernel(x_ref, w1_ref, b1_ref, w2_ref, b2_ref, o_ref):
    """One batch tile.
    x_ref:  (TB, D) f32/bf16   w1_ref: (D, H) bf16   b1_ref: (1, H) f32
    w2_ref: (1, H)  f32        b2_ref: (1, 1) f32 (SMEM)
    o_ref:  (1, TB) f32        (batch on the 128-lane axis -> unmasked vector stores)
    """
    x = x_ref[...]
    if x.dtype != jnp.bfloat16:
        x = x.astype(jnp.bfloat16)  # cheap VPU cast, hidden under the MXU cadence
    # Layer 1 on the MXU: bf16 operands, f32 accumulation.
    h = jnp.dot(x, w1_ref[...], preferred_element_type=jnp.float32)  # (TB, H) f32
    # Bias + sigmoid in f32 (portable to v5e, which has no bf16 VPU/EUP).
    # TODO(synk): if a bundle dump on v6e/v7x shows the EUP slot binding, cast h to
    #             bf16 before the sigmoid (halves EUP pushes); keep f32 on v5e.
    h = jax.nn.sigmoid(h + b1_ref[...])
    # Layer 2: contract H with w2 as the (1, H) lhs against h's H axis so the
    # (1, TB) result comes out with batch already on the 128-lane axis.
    # This orientation costs only ~H/256 vmatmul pushes; the alternative
    # h @ w2^T -> (TB, 1) column would add another (TB/8)*(H/256) pushes plus a
    # lane-sparse store.
    o = jax.lax.dot_general(
        w2_ref[...], h,
        dimension_numbers=(((1,), (1,)), ((), ())),
        preferred_element_type=jnp.float32,
    )  # (1, TB)
    o_ref[...] = o + b2_ref[0, 0]


def _choose_tiling(B, tb):
    """Pick (TB, Bp) so that
         * the (TB, D) input block satisfies the (8,128)/full-dim rule,
         * the lane-dense (1, TB) output block is either 128-aligned or full-dim,
         * there are >=2 tiles (feeds both v7x TensorCores) whenever the extra
           batch padding this implies is small (<=128 rows)."""
    tb = max(128, _round_up(tb, 128))  # keep output stores unmasked / rule-safe
    if B <= tb:
        TB = _round_up(B, 8)  # single full-dim tile
        Bp = TB
        if TB >= 256:
            tb2 = _round_up(_cdiv(TB, 2), 128)
            bp2 = 2 * tb2
            if bp2 - Bp <= 128:  # split is ~free on 1-TC chips, ~2x on v7x
                TB, Bp = tb2, bp2
    else:
        bp_min = _round_up(B, 128)
        TB = min(tb, _round_up(_cdiv(bp_min, 2), 128))  # guarantees >=2 tiles
        Bp = _round_up(B, TB)
    return TB, Bp


def predictor_forward(x, w1_bf16, b1, w2, b2, *, tb=1024):
    """x: (B, D) f32 or bf16; w1_bf16: (D, H) bf16 (transposed vs. PyTorch storage);
    b1: (1, H) f32; w2: (1, H) f32 (PyTorch-native layout of Linear(H,1).weight);
    b2: (1, 1) f32.  Returns (B,) f32 == Predictor.forward(x)."""
    B, D = x.shape
    H = w1_bf16.shape[1]

    TB, Bp = _choose_tiling(B, tb)
    if Bp != B:
        x = jnp.pad(x, ((0, Bp - B), (0, 0)))
    num_tiles = Bp // TB

    # VMEM budget sized from real usage (x2 headroom), not a blanket 48 MiB:
    # bf16 W1 (double-buffered by the pipeline), x tiles, out rows, biases, f32 h.
    est = (2 * D * H * 2
           + 2 * TB * D * x.dtype.itemsize
           + 2 * TB * 4
           + 4 * H * 4
           + TB * H * 4)
    vmem_limit = int(max(16 << 20, min(64 << 20, 2 * est)))

    out_row = pl.pallas_call(
        predictor_kernel,
        out_shape=jax.ShapeDtypeStruct((1, Bp), jnp.float32),
        grid=(num_tiles,),
        in_specs=[
            # x: one (TB, D) tile per grid step -> double-buffered DMA overlapping
            # the previous tile's matmul.
            pl.BlockSpec((TB, D), lambda i: (i, 0)),
            # Weights / biases: constant index_map -> DMA'd once, VMEM-resident.
            pl.BlockSpec((D, H), lambda i: (0, 0)),
            pl.BlockSpec((1, H), lambda i: (0, 0)),
            pl.BlockSpec((1, H), lambda i: (0, 0)),
            # Scalar second bias lives in SMEM.
            pl.BlockSpec(memory_space=pltpu.MemorySpace.SMEM),
        ],
        # Lane-dense output: batch on the 128-lane axis, one (1, TB) slab per tile.
        out_specs=pl.BlockSpec((1, TB), lambda i: (0, i)),
        compiler_params=pltpu.CompilerParams(
            dimension_semantics=("parallel",),  # batch tiles are independent
            vmem_limit_bytes=vmem_limit,
        ),
    )(x, w1_bf16, b1, w2, b2)

    return out_row[0, :B]  # squeeze(1) + drop batch padding


def init_params(key, input_dim, hidden=HIDDEN):
    """Deterministic init mimicking PyTorch nn.Linear default U[-1/sqrt(fan_in), +]."""
    k1, k2, k3, k4 = jax.random.split(key, 4)
    bound1 = 1.0 / jnp.sqrt(input_dim)
    bound2 = 1.0 / jnp.sqrt(hidden)
    w1 = jax.random.uniform(k1, (input_dim, hidden), jnp.float32, -bound1, bound1)
    b1 = jax.random.uniform(k2, (1, hidden), jnp.float32, -bound1, bound1)
    w2 = jax.random.uniform(k3, (1, hidden), jnp.float32, -bound2, bound2)
    b2 = jax.random.uniform(k4, (1, 1), jnp.float32, -bound2, bound2)
    return w1, b1, w2, b2


def reference_forward(x, w1, b1, w2, b2):
    h = jax.nn.sigmoid(x @ w1 + b1)
    return h @ w2[0] + b2[0, 0]


if __name__ == "__main__":
    key = jax.random.PRNGKey(0)
    kx, kp, kx2, kx3 = jax.random.split(key, 4)

    D, H = 32, HIDDEN
    w1, b1, w2, b2 = init_params(kp, D, H)
    w1_bf16 = w1.astype(jnp.bfloat16)  # storage dtype of the hidden weights

    ok = True

    # Small batch: single full-dim tile (TB = 8).
    B = 8
    x = jax.random.normal(kx, (B, D), jnp.float32)
    out = jax.block_until_ready(predictor_forward(x, w1_bf16, b1, w2, b2))
    ref = reference_forward(x, w1, b1, w2, b2)
    ok &= out.shape == (B,)
    ok &= bool(jnp.allclose(out, ref, atol=1e-2, rtol=1e-2))

    # Multi-tile + batch-padding path (B > tb): 3 tiles of 128.
    B2 = 300
    x2 = jax.random.normal(kx2, (B2, D), jnp.float32)
    out2 = jax.block_until_ready(predictor_forward(x2, w1_bf16, b1, w2, b2, tb=128))
    ref2 = reference_forward(x2, w1, b1, w2, b2)
    ok &= out2.shape == (B2,)
    ok &= bool(jnp.allclose(out2, ref2, atol=1e-2, rtol=1e-2))

    # Even 2-tile split path (feeds both v7x TensorCores) at the default tb.
    B3 = 512
    x3 = jax.random.normal(kx3, (B3, D), jnp.float32)
    out3 = jax.block_until_ready(predictor_forward(x3, w1_bf16, b1, w2, b2))
    ref3 = reference_forward(x3, w1, b1, w2, b2)
    ok &= out3.shape == (B3,)
    ok &= bool(jnp.allclose(out3, ref3, atol=1e-2, rtol=1e-2))

    assert ok
    print("KERNEL_OK")
</pallas_src>

<mosaic_0001>
module attributes {stable_mosaic.version = 11 : i64} {
  func.func @predictor_kernel(%arg0: i32, %arg1: memref<8x32xf32, #tpu.memory_space<vmem>>, %arg2: memref<32x1024xbf16, #tpu.memory_space<vmem>>, %arg3: memref<1x1024xf32, #tpu.memory_space<vmem>>, %arg4: memref<1x1024xf32, #tpu.memory_space<vmem>>, %arg5: memref<1x1xf32, #tpu.memory_space<smem>>, %arg6: memref<1x8xf32, #tpu.memory_space<vmem>>) attributes {dimension_semantics = [#tpu.dimension_semantics<parallel>], iteration_bounds = array<i64: 1>, scalar_prefetch = 0 : i64, scratch_operands = 0 : i64, tpu.core_type = #tpu.core_type<tc>, window_params = [{transform_indices = @transform_0, window_bounds = array<i64: 8, 32>}, {pipeline_mode = #tpu.pipeline_mode<synchronous>, transform_indices = @transform_1, window_bounds = array<i64: 32, 1024>}, {pipeline_mode = #tpu.pipeline_mode<synchronous>, transform_indices = @transform_2, window_bounds = array<i64: 1, 1024>}, {pipeline_mode = #tpu.pipeline_mode<synchronous>, transform_indices = @transform_3, window_bounds = array<i64: 1, 1024>}, {transform_indices = @transform_4, window_bounds = array<i64: 1, 1>}, {transform_indices = @transform_5, window_bounds = array<i64: 1, 8>}]} {
    %c0 = arith.constant 0 : index
    %c0_0 = arith.constant 0 : index
    %0 = vector.load %arg1[%c0, %c0_0] : memref<8x32xf32, #tpu.memory_space<vmem>>, vector<8x32xf32>
    %1 = arith.truncf %0 : vector<8x32xf32> to vector<8x32xbf16>
    %c0_1 = arith.constant 0 : index
    %c0_2 = arith.constant 0 : index
    %2 = vector.load %arg2[%c0_1, %c0_2] : memref<32x1024xbf16, #tpu.memory_space<vmem>>, vector<32x1024xbf16>
    %cst = arith.constant dense<0.000000e+00> : vector<8x1024xf32>
    %3 = tpu.matmul %1, %2, %cst {dimension_numbers = #tpu.dot_dimension_numbers<[1], [0], [0], [1], [0, 0, 1, 1], [], []>} : vector<8x32xbf16>, vector<32x1024xbf16>, vector<8x1024xf32> -> vector<8x1024xf32>
    %c0_3 = arith.constant 0 : index
    %c0_4 = arith.constant 0 : index
    %4 = vector.load %arg3[%c0_3, %c0_4] : memref<1x1024xf32, #tpu.memory_space<vmem>>, vector<1x1024xf32>
    %5 = vector.broadcast %4 : vector<1x1024xf32> to vector<8x1024xf32>
    %6 = arith.addf %3, %5 : vector<8x1024xf32>
    %7 = arith.negf %6 : vector<8x1024xf32>
    %8 = math.exp %7 : vector<8x1024xf32>
    %cst_5 = arith.constant 1.000000e+00 : f32
    %9 = vector.broadcast %cst_5 : f32 to vector<8x1024xf32>
    %10 = arith.addf %9, %8 : vector<8x1024xf32>
    %11 = arith.divf %9, %10 : vector<8x1024xf32>
    %c0_6 = arith.constant 0 : index
    %c0_7 = arith.constant 0 : index
    %12 = vector.load %arg4[%c0_6, %c0_7] : memref<1x1024xf32, #tpu.memory_space<vmem>>, vector<1x1024xf32>
    %cst_8 = arith.constant dense<0.000000e+00> : vector<1x8xf32>
    %13 = tpu.matmul %12, %11, %cst_8 {dimension_numbers = #tpu.dot_dimension_numbers<[1], [1], [0], [0], [0, 0, 1, 0], [], []>} : vector<1x1024xf32>, vector<8x1024xf32>, vector<1x8xf32> -> vector<1x8xf32>
    %c0_9 = arith.constant 0 : index
    %c0_10 = arith.constant 0 : index
    %14 = memref.load %arg5[%c0_9, %c0_10] : memref<1x1xf32, #tpu.memory_space<smem>>
    %15 = vector.broadcast %14 : f32 to vector<1x8xf32>
    %16 = arith.addf %13, %15 : vector<1x8xf32>
    %c0_11 = arith.constant 0 : index
    %c0_12 = arith.constant 0 : index
    %17 = vector.load %arg6[%c0_11, %c0_12] : memref<1x8xf32, #tpu.memory_space<vmem>>, vector<1x8xf32>
    tpu.vector_store %arg6[%c0_11, %c0_12], %16 {strides = array<i32>} : memref<1x8xf32, #tpu.memory_space<vmem>>, vector<1x8xf32>,
    return
  }
  func.func @transform_0(%arg0: i32) -> (i32, i32) {
    %c0_i32 = arith.constant 0 : i32
    %c0_i32_0 = arith.constant 0 : i32
    return %arg0, %c0_i32 : i32, i32
  }
  func.func @transform_1(%arg0: i32) -> (i32, i32) {
    %c0_i32 = arith.constant 0 : i32
    %c0_i32_0 = arith.constant 0 : i32
    %c0_i32_1 = arith.constant 0 : i32
    return %c0_i32, %c0_i32_0 : i32, i32
  }
  func.func @transform_2(%arg0: i32) -> (i32, i32) {
    %c0_i32 = arith.constant 0 : i32
    %c0_i32_0 = arith.constant 0 : i32
    %c0_i32_1 = arith.constant 0 : i32
    return %c0_i32, %c0_i32_0 : i32, i32
  }
  func.func @transform_3(%arg0: i32) -> (i32, i32) {
    %c0_i32 = arith.constant 0 : i32
    %c0_i32_0 = arith.constant 0 : i32
    %c0_i32_1 = arith.constant 0 : i32
    return %c0_i32, %c0_i32_0 : i32, i32
  }
  func.func @transform_4(%arg0: i32) -> (i32, i32) {
    %c0_i32 = arith.constant 0 : i32
    %c0_i32_0 = arith.constant 0 : i32
    %c0_i32_1 = arith.constant 0 : i32
    return %c0_i32, %c0_i32_0 : i32, i32
  }
  func.func @transform_5(%arg0: i32) -> (i32, i32) {
    %c0_i32 = arith.constant 0 : i32
    %c0_i32_0 = arith.constant 0 : i32
    return %c0_i32, %arg0 : i32, i32
  }
}

</mosaic_0001>

<bundles_post_ra>
// kernel: tpu_custom_call.1
= control target key start
LH: loop header
LB: loop body
LE: loop exit
PB: predicated region body
PF: predicated region fallthrough
CT: control target
= control target key end

     0   :  { %11 = vsyncpa [#allocation4], 0  ;;  %s1069_s0 = inlined_call_operand.hbm [shape: f32[8,32], index: 0, kind: input, shape index: {}]   ;;  %s1070_s1 = inlined_call_operand.hbm [shape: bf16[32,1024], index: 1, kind: input, shape index: {}]   ;;  %s1071_s2 = inlined_call_operand.vmem [shape: f32[1,1024], index: 2, kind: input, shape index: {}]   ;;  %s1072_s3 = inlined_call_operand.hbm [shape: f32[1,1024], index: 3, kind: input, shape index: {}]   ;;  %s1073_s4 = inlined_call_operand.<no memory space> [shape: f32[1,1], index: 4, kind: input, shape index: {}]   ;;  %s1074_s5 = inlined_call_operand.hbm [shape: f32[1,8], index: 5, kind: output, shape index: {}]  }
   0x1   :  { %12 = vsyncpa [#allocation7], 0 }
   0x2   :  { %13 = vsyncpa [#allocation5], 0  ;;  %s926_s18 = smov [#allocation6]   ;;  %s832_s22 = scalar_lea.hbm %s1070_s1, 2048 }
   0x3   :  { %s29_s19 = sshll.u32 %s926_s18, 4  ;;  %p833_p0 = scmp.ne.s32.totalorder %s1070_s1, %s832_s22  ;;  %s30_s19 = int_to_ptr.vmem [resolvable:$true] %s29_s19 }
   0x4   :  { %p836_p1 = scmp.lt.u32.totalorder %s832_s22, %s1070_s1 }
   0x6   :  { %p838_p2 = pnand %p836_p1, %p833_p0 }
   0x8   :  { %841 = shalt.err (!%p838_p2)
}
   0x9   :  { %s842_s27 = scalar_lea.vmem %s30_s19, 2048  ;;  %p847_p4 = scmp.lt.s32.totalorder %s30_s19, %s30_s19 }
   0xa   :  { %p843_p3 = scmp.ne.s32.totalorder %s30_s19, %s842_s27  ;;  %p848_p5 = scmp.lt.s32.totalorder %s842_s27, %s842_s27 }
   0xc   :  { %p849_p6 = por %p848_p5, %p847_p4 }
   0xe   :  { %p850_p7 = pnand %p849_p6, %p843_p3 }
  0x10   :  { %853 = shalt.err (!%p850_p7)
}
  0x11   :  { %s927_s28 = smov 512   ;;  %s928_s29 = smov 32  }
  0x12   :  { %35 = dma.hbm_to_vmem [thread:$0]  %s1070_s1, 2048, %s30_s19, [#allocation7], %s927_s28, %s927_s28, %s928_s29  }
  0x13   :  { %s929_s7 = smov [#allocation3]   ;;  %s930_s9 = smov [#allocation8]  }
  0x14   :  { %s20_s8 = sshll.u32 %s929_s7, 4  ;;  %s44_s10 = sshll.u32 %s930_s9, 4  ;;  %s21_s8 = int_to_ptr.vmem [resolvable:$true] %s20_s8  ;;  %s45_s10 = int_to_ptr.vmem [resolvable:$true] %s44_s10 }
  0x15   :  { %s854_s13 = scalar_lea.hbm %s1069_s0, 128 }
  0x16   :  { %p855_p8 = scmp.ne.s32.totalorder %s1069_s0, %s854_s13  ;;  %p858_p9 = scmp.lt.u32.totalorder %s854_s13, %s1069_s0 }
  0x18   :  { %p860_p10 = pnand %p858_p9, %p855_p8 }
  0x1a   :  { %863 = shalt.err (!%p860_p10)
}
  0x1b   :  { %s864_s1 = scalar_lea.vmem %s21_s8, 128  ;;  %p869_p12 = scmp.lt.s32.totalorder %s21_s8, %s21_s8 }
  0x1c   :  { %p865_p11 = scmp.ne.s32.totalorder %s21_s8, %s864_s1  ;;  %p870_p13 = scmp.lt.s32.totalorder %s864_s1, %s864_s1 }
  0x1e   :  { %p871_p0 = por %p870_p13, %p869_p12 }
  0x20   :  { %p872_p1 = pnand %p871_p0, %p865_p11 }
  0x22   :  { %875 = shalt.err (!%p872_p1)
}
  0x23   :  { %23 = dma.hbm_to_vmem [thread:$0]  %s1069_s0, 128, %s21_s8, [#allocation4]  }
  0x24   :  { %s876_s22 = scalar_lea.hbm %s1072_s3, 128 }
  0x25   :  { %p877_p2 = scmp.ne.s32.totalorder %s1072_s3, %s876_s22  ;;  %p880_p3 = scmp.lt.u32.totalorder %s876_s22, %s1072_s3 }
  0x27   :  { %p882_p4 = pnand %p880_p3, %p877_p2 }
  0x29   :  { %885 = shalt.err (!%p882_p4)
}
  0x2a   :  { %s886_s27 = scalar_lea.vmem %s45_s10, 128  ;;  %p891_p6 = scmp.lt.s32.totalorder %s45_s10, %s45_s10 }
  0x2b   :  { %p887_p5 = scmp.ne.s32.totalorder %s45_s10, %s886_s27  ;;  %p892_p7 = scmp.lt.s32.totalorder %s886_s27, %s886_s27 }
  0x2d   :  { %p893_p8 = por %p892_p7, %p891_p6 }
  0x2f   :  { %p894_p9 = pnand %p893_p8, %p887_p5 }
  0x31   :  { %897 = shalt.err (!%p894_p9)
}
  0x32   :  { %47 = dma.hbm_to_vmem [thread:$0]  %s1072_s3, 128, %s45_s10, [#allocation7]  }
  0x33   :  { %920 = dma.done.wait [#allocation4], 128  }
  0x34   :  { %921 = vsyncadd [#allocation4], 4294967168 }
  0x35   :  { %922 = dma.done.wait [#allocation7], 2176  }
  0x36   :  { %923 = vsyncadd [#allocation7], 4294965120  ;;  %v931_v0 = vmov 0   ;;  %v62_v1 = vld [vmem:[#allocation6] sm:$0xff]  ;;  %v63_v8 = vld [vmem:[#allocation6 + $0x8] sm:$0xff]  ;;  %vm200_vm0 = vcmask 261120   ;;  %v80_v35 = vlaneseq }
  0x37   :  { %236 = vmatprep.mubr.bf16.mxu1 %v931_v0  ;;  %318 = vmatprep.mubr.bf16.mxu0 %v931_v0  ;;  %v66_v2 = vld [vmem:[#allocation6 + $0x20] sm:$0xff]  ;;  %v67_v9 = vld [vmem:[#allocation6 + $0x28] sm:$0xff]  ;;  %v64_v10 = vld [vmem:[#allocation6 + $0x10] sm:$0xff]  ;;  %s932_s6 = smov [#allocation9]   ;;  %vm740_vm1 = vcmask 57344  }
  0x38   :  { %v70_v3 = vld [vmem:[#allocation6 + $0x40] sm:$0xff]  ;;  %v759_v4 = vcombine.high %v62_v1, %v66_v2  ;;  %v758_v5 = vcombine.low %v62_v1, %v66_v2  ;;  %v68_v11 = vld [vmem:[#allocation6 + $0x30] sm:$0xff]  ;;  %v60_v14 = vld [vmem:[#allocation3] sm:$0xff]  ;;  %v761_v18 = vcombine.high %v63_v8, %v67_v9  ;;  %v760_v24 = vcombine.low %v63_v8, %v67_v9  ;;  %s748_s7 = sshll.u32 %s932_s6, 4  ;;  %s749_s7 = int_to_ptr.vmem [resolvable:$true] %s748_s7 }
  0x39   :  { %v74_v6 = vld [vmem:[#allocation6 + $0x60] sm:$0xff]  ;;  %v72_v12 = vld [vmem:[#allocation6 + $0x50] sm:$0xff]  ;;  %v763_v15 = vcombine.high %v64_v10, %v68_v11  ;;  %v762_v16 = vcombine.low %v64_v10, %v68_v11  ;;  %v71_v20 = vld [vmem:[#allocation6 + $0x48] sm:$0xff]  ;;  %v61_v22 = vpack.c.bf16 %v60_v14, %v60_v14  ;;  %v1003_v36 = vshrl.u32 %v80_v35, 7  ;;  %s898_s8 = scalar_lea.vmem %s749_s7, 16  ;;  %s902_s9 = scalar_lea.vmem %s749_s7, 32 }
  0x3a   :  { %v767_v7 = vcombine.high %v70_v3, %v74_v6  ;;  %204 = vmatprep.subr.bf16.mxu1 %v759_v4  ;;  %v766_v13 = vcombine.low %v70_v3, %v74_v6  ;;  %v76_v17 = vld [vmem:[#allocation6 + $0x70] sm:$0xff]  ;;  %v75_v21 = vld [vmem:[#allocation6 + $0x68] sm:$0xff]  ;;  %v65_v26 = vld [vmem:[#allocation6 + $0x18] sm:$0xff]  ;;  %p899_p10 = scmp.ne.s32.totalorder %s749_s7, %s898_s8  ;;  %p903_p11 = scmp.lt.s32.totalorder %s749_s7, %s749_s7 }
  0x3b   :  { %205 = vmatpush1.bf16.msra.mxu1 %v758_v5  ;;  %v771_v19 = vcombine.high %v72_v12, %v76_v17  ;;  %286 = vmatprep.subr.bf16.mxu0 %v763_v15  ;;  %v770_v23 = vcombine.low %v72_v12, %v76_v17  ;;  %v769_v25 = vcombine.high %v71_v20, %v75_v21  ;;  %v69_v27 = vld [vmem:[#allocation6 + $0x38] sm:$0xff]  ;;  %v1005_v37 = vld [vmem:[#allocation8] sm:$0xff]  ;;  %v86_v38 = vsub.s32 1, %v1003_v36  ;;  %p904_p12 = scmp.lt.s32.totalorder %s902_s9, %s898_s8 }
  0x3c   :  { %206 = vmatprep.subr.bf16.mxu1 %v767_v7  ;;  %287 = vmatpush1.bf16.msra.mxu0 %v762_v16  ;;  %v768_v28 = vcombine.low %v71_v20, %v75_v21  ;;  %v765_v29 = vcombine.high %v65_v26, %v69_v27  ;;  %v73_v30 = vld [vmem:[#allocation6 + $0x58] sm:$0xff]  ;;  %v764_v32 = vcombine.low %v65_v26, %v69_v27  ;;  %v82_v40 = vsub.s32 0, %v1003_v36 }
  0x3d   :  { %288 = vmatprep.subr.bf16.mxu0 %v771_v19  ;;  %v77_v31 = vld [vmem:[#allocation6 + $0x78] sm:$0xff]  ;;  %v427_v39 = vrot.slane %v1005_v37, %v86_v38  ;;  %v98_v42 = vsub.s32 4, %v1003_v36  ;;  %v102_v44 = vsub.s32 5, %v1003_v36  ;;  %v90_v50 = vsub.s32 2, %v1003_v36  ;;  %p905_p13 = por %p904_p12, %p903_p11 }
  0x3e   :  { %v773_v33 = vcombine.high %v73_v30, %v77_v31  ;;  %v772_v34 = vcombine.low %v73_v30, %v77_v31  ;;  %v78_v41 = vld [vmem:[%s1071_s2] sm:$0xff]  ;;  %v94_v54 = vsub.s32 3, %v1003_v36  ;;  %v106_v7 = vsub.s32 6, %v1003_v36 }
  0x3f   :  { %207 = vmatpush1.bf16.msra.mxu1 %v766_v13  ;;  %v83_v43 = vrot.slane %v78_v41, %v82_v40  ;;  %v87_v45 = vrot.slane %v78_v41, %v86_v38  ;;  %v99_v47 = vrot.slane %v78_v41, %v98_v42  ;;  %v103_v51 = vrot.slane %v78_v41, %v102_v44  ;;  %p906_p0 = pnand %p905_p13, %p899_p10 }
  0x40   :  { %245 = vmatprep.subr.bf16.mxu1 %v761_v18  ;;  %289 = vmatpush1.bf16.msra.mxu0 %v770_v23  ;;  %v91_v61 = vrot.slane %v78_v41, %v90_v50  ;;  %v110_v10 = vsub.s32 7, %v1003_v36  ;;  %v107_v14 = vrot.slane %v78_v41, %v106_v7 }
  0x42   :  { %774 = vmatmul.mubr.msk.bf16.vlgmr.msra.gmra.mrb[0].mxu1 %vm200_vm0, %v61_v22  ;;  %v111_v15 = vrot.slane %v78_v41, %v110_v10 }
  0x43   :  { %246 = vmatpush1.bf16.msra.mxu1 %v760_v24  ;;  %277 = vmatprep.mubr.bf16.mxu1 %v931_v0 }
  0x44   :  { %247 = vmatprep.subr.bf16.mxu1 %v769_v25  ;;  %776 = vmatmul.mubr.msk.bf16.vlgmr.msra.gmra.mrb[0].mxu0 %vm200_vm0, %v61_v22 }
  0x45   :  { %524 = vmatprep.mubr.f32.mxu0 %v427_v39 }
  0x47   :  { %248 = vmatpush1.bf16.msra.mxu1 %v768_v28 }
  0x48   :  { %327 = vmatprep.subr.bf16.mxu1 %v765_v29 }
  0x4a   :  { %775 = vmatmul.mubr.msk.bf16.vlgmr.msra.gmra.mrb[4].mxu1 %vm200_vm0, %v61_v22 }
  0x4b   :  { %328 = vmatpush1.bf16.msra.mxu1 %v764_v32  ;;  %359 = vmatprep.mubr.bf16.mxu1 %v931_v0  ;;  %v95_v0 = vrot.slane %v78_v41, %v94_v54  ;;  %v423_v41 = vrot.slane %v1005_v37, %v82_v40  ;;  %v431_v40 = vrot.slane %v1005_v37, %v90_v50 }
  0x4c   :  { %329 = vmatprep.subr.bf16.mxu1 %v773_v33  ;;  %v451_v50 = vrot.slane %v1005_v37, %v110_v10 }
  0x4f   :  { %330 = vmatpush1.bf16.msra.mxu1 %v772_v34 }
  0x52   :  { %777 = vmatmul.mubr.msk.bf16.vlgmr.msra.gmra.mrb[8].mxu1 %vm200_vm0, %v61_v22 }
 0x115   :  { %v238_v46 = vpop.f32.mrb[0].mxu1 }
 0x116   :  { %v239_v48 = vadd.f32 %v238_v46, %v83_v43  ;;  %v240_v49 = vpop.f32.mrb[1].mxu1  ;;  %v435_v43 = vrot.slane %v1005_v37, %v94_v54 }
 0x117   :  { %v241_v52 = vadd.f32 %v240_v49, %v87_v45  ;;  %v242_v53 = vpop.f32.mrb[2].mxu1  ;;  %v320_v57 = vpop.f32.mrb[0].mxu0 }
 0x118   :  { %v778_v55 = vmul.f32 -1.442695, %v239_v48  ;;  %v243_v56 = vpop.f32.mrb[3].mxu1  ;;  %v321_v59 = vadd.f32 %v320_v57, %v99_v47  ;;  %v322_v60 = vpop.f32.mrb[1].mxu0  ;;  %v443_v53 = vrot.slane %v1005_v37, %v102_v44  ;;  %v447_v44 = vrot.slane %v1005_v37, %v106_v7 }
 0x119   :  { %v779_v58 = vmul.f32 -1.442695, %v241_v52  ;;  %v323_v62 = vadd.f32 %v322_v60, %v103_v51  ;;  %v324_v63 = vpop.f32.mrb[2].mxu0 }
 0x11a   :  { %800 = vpow2.f32 %v778_v55  ;;  %v325_v1 = vpop.f32.mrb[3].mxu0  ;;  %v782_v4 = vmul.f32 -1.442695, %v321_v59  ;;  %v439_v55 = vrot.slane %v1005_v37, %v98_v42 }
 0x11b   :  { %802 = vpow2.f32 %v779_v58  ;;  %v783_v2 = vmul.f32 -1.442695, %v323_v62  ;;  %v418_v58 = vstv %s1073_s4 }
 0x11d   :  { %v279_v3 = vpop.f32.mrb[4].mxu1  ;;  %804 = vpow2.f32 %v783_v2 }
 0x11e   :  { %v280_v5 = vadd.f32 %v279_v3, %v91_v61  ;;  %v281_v6 = vpop.f32.mrb[5].mxu1  ;;  %806 = vpow2.f32 %v782_v4 }
 0x11f   :  { %v282_v8 = vadd.f32 %v281_v6, %v95_v0  ;;  %v283_v9 = vpop.f32.mrb[6].mxu1 }
 0x120   :  { %v780_v11 = vmul.f32 -1.442695, %v280_v5  ;;  %v284_v12 = vpop.f32.mrb[7].mxu1 }
 0x121   :  { %v781_v13 = vmul.f32 -1.442695, %v282_v8 }
 0x122   :  { %808 = vpow2.f32 %v780_v11 }
 0x123   :  { %810 = vpow2.f32 %v781_v13 }
 0x124   :  { %v801_v16 = vpop.eup %800 }
 0x125   :  { %v803_v17 = vpop.eup %802  ;;  %v392_v18 = vadd.f32 1.0, %v801_v16  ;;  %v361_v19 = vpop.f32.mrb[8].mxu1 }
 0x126   :  { %v393_v20 = vadd.f32 1.0, %v803_v17  ;;  %v362_v21 = vadd.f32 %v361_v19, %v107_v14  ;;  %v363_v22 = vpop.f32.mrb[9].mxu1 }
 0x127   :  { %v364_v23 = vadd.f32 %v363_v22, %v111_v15  ;;  %v365_v24 = vpop.f32.mrb[10].mxu1  ;;  %v805_v25 = vpop.eup %804 }
 0x128   :  { %812 = vrcp.f32 %v393_v20  ;;  %v784_v26 = vmul.f32 -1.442695, %v362_v21  ;;  %v366_v27 = vpop.f32.mrb[11].mxu1  ;;  %v807_v29 = vpop.eup %806  ;;  %v397_v30 = vadd.f32 1.0, %v805_v25 }
 0x129   :  { %814 = vrcp.f32 %v392_v18  ;;  %v785_v28 = vmul.f32 -1.442695, %v364_v23  ;;  %v396_v35 = vadd.f32 1.0, %v807_v29 }
 0x12a   :  { %816 = vpow2.f32 %v784_v26 }
 0x12b   :  { %818 = vpow2.f32 %v785_v28 }
 0x12c   :  { %v809_v31 = vpop.eup %808  ;;  %820 = vrcp.f32 %v397_v30 }
 0x12d   :  { %v811_v32 = vpop.eup %810  ;;  %v394_v33 = vadd.f32 1.0, %v809_v31 }
 0x12e   :  { %v395_v34 = vadd.f32 1.0, %v811_v32 }
 0x130   :  { %822 = vrcp.f32 %v395_v34 }
 0x131   :  { %824 = vrcp.f32 %v394_v33 }
 0x132   :  { %v813_v38 = vpop.eup %812  ;;  %826 = vrcp.f32 %v396_v35 }
 0x133   :  { %v815_v39 = vpop.eup %814  ;;  %460 = vmatprep.subr.mxu0 %v813_v38 }
 0x134   :  { %461 = vmatpush1.xpose.msra.mxu0 %v815_v39  ;;  %v817_v45 = vpop.eup %816 }
 0x135   :  { %v819_v46 = vpop.eup %818  ;;  %v398_v47 = vadd.f32 1.0, %v817_v45 }
 0x136   :  { %v399_v48 = vadd.f32 1.0, %v819_v46  ;;  %v821_v49 = vpop.eup %820 }
 0x137   :  { %525 = vmatmul.mubr.f32.vlgmr.msra.gmra.mrb[4].mxu0 %v423_v41 }
 0x138   :  { %594 = vmatprep.mubr.f32.mxu0 %v435_v43  ;;  %828 = vrcp.f32 %v399_v48 }
 0x139   :  { %830 = vrcp.f32 %v398_v47 }
 0x13a   :  { %v823_v51 = vpop.eup %822 }
 0x13b   :  { %v825_v52 = vpop.eup %824  ;;  %530 = vmatprep.subr.mxu0 %v823_v51 }
 0x13c   :  { %531 = vmatpush1.xpose.msra.mxu0 %v825_v52  ;;  %v827_v54 = vpop.eup %826 }
 0x13d   :  { %600 = vmatprep.subr.mxu0 %v821_v49 }
 0x13f   :  { %595 = vmatmul.mubr.f32.vlgmr.msra.gmra.mrb[4].mxu0 %v431_v40 }
 0x140   :  { %601 = vmatpush1.xpose.msra.mxu0 %v827_v54  ;;  %664 = vmatprep.mubr.f32.mxu0 %v443_v53 }
 0x142   :  { %v829_v56 = vpop.eup %828 }
 0x143   :  { %v831_v57 = vpop.eup %830  ;;  %670 = vmatprep.subr.mxu0 %v829_v56 }
 0x147   :  { %665 = vmatmul.mubr.f32.vlgmr.msra.gmra.mrb[4].mxu0 %v439_v55 }
 0x148   :  { %671 = vmatpush1.xpose.msra.mxu0 %v831_v57  ;;  %734 = vmatprep.mubr.f32.mxu0 %v451_v50 }
 0x14f   :  { %735 = vmatmul.mubr.f32.vlgmr.msra.gmra.mrb[4].mxu0 %v447_v44 }
 0x222   :  { %v736_v42 = vpop.f32.mrb[4].mxu0 }
 0x223   :  { %v786_v59 = vadd.f32 %v736_v42, %v418_v58  ;;  %v738_v60 = vpop.f32.mrb[5].mxu0 }
 0x225   :  { %741 = vst.msk [vmem:[#allocation9] sm:$0x1] %vm740_vm1, %v786_v59 }
 0x226   :  { %909 = shalt.err (!%p906_p0)
}
 0x227   :  { %s910_s4 = scalar_lea.hbm %s1074_s5, 16 }
 0x228   :  { %p911_p1 = scmp.ne.s32.totalorder %s1074_s5, %s910_s4  ;;  %p914_p2 = scmp.lt.u32.totalorder %s910_s4, %s1074_s5 }
 0x22a   :  { %p916_p3 = pnand %p914_p2, %p911_p1 }
 0x22c   :  { %919 = shalt.err (!%p916_p3)
}
 0x22d   :  { %751 = dma.vmem_to_hbm [thread:$0]  %s749_s7, 16, %s1074_s5, [#allocation5]  }
 0x22e   :  { %924 = dma.done.wait [#allocation5], 16  }
 0x22f   :  { %925 = vsyncadd [#allocation5], 4294967280 }
 0x230   :  { %755 = vsyncpa [#allocation4], 1 }
 0x231   :  { %756 = vsyncpa [#allocation7], 1 }
 0x232   :  { %757 = vsyncpa [#allocation5], 1 }

</bundles_post_ra>
